<compile_context>
chip_gen: v5e
topology: v5e:2x2
jax: 0.10.0
libtpu: 0.0.40
codegen_flags: <defaults>
</compile_context>

<pallas_src>
import functools

import jax
import jax.numpy as jnp
from jax.experimental import pallas as pl
from jax.experimental.pallas import tpu as pltpu


def _normalize_total_kernel(x_ref, o_ref, *, target_count, eps):
    # NOTE: the last row-block may be ragged. Its out-of-bounds rows contain
    # unspecified data and may produce inf/nan; this is safe ONLY because rows
    # are fully independent and out-of-bounds output writes are masked. Do not
    # add any cross-row interaction here without restoring host-side padding.
    x = x_ref[...]
    # Per-cell total over the gene (lane) axis, accumulated in f32 without
    # materializing an f32 copy of the whole block.
    total = jnp.sum(x, axis=-1, keepdims=True, dtype=jnp.float32)       # (tile_n, 1)
    # One exact reciprocal per row (EUP, hidden under DMA), then a single
    # broadcast multiply per element. Scale stays in f32; only the product is
    # cast to the output dtype.
    scale = target_count * pl.reciprocal(total + eps, approx=False)     # (tile_n, 1) f32
    o_ref[...] = (x * scale).astype(o_ref.dtype)


def _sublane_multiple(dtype) -> int:
    """Packed sublane tile: 8 rows for 4-byte, 16 for 2-byte, 32 for 1-byte dtypes."""
    itemsize = jnp.dtype(dtype).itemsize
    return 8 * max(1, 4 // max(1, itemsize))


def _vmem_capacity_bytes() -> int:
    try:
        info = pltpu.get_tpu_info()
        return int(getattr(info, "vmem_capacity_bytes", 64 * 1024 * 1024))
    except Exception:  # info unavailable — assume the smallest (v7x) VMEM
        return 64 * 1024 * 1024


def _round_up(x: int, m: int) -> int:
    return pl.cdiv(x, m) * m


def _pick_tile_and_vmem(n: int, g: int, dtype, tile_n: int | None):
    """Row-tile size + scoped-VMEM limit, generation- and dtype-aware."""
    itemsize = jnp.dtype(dtype).itemsize
    sub = _sublane_multiple(dtype)
    vmem_bytes = _vmem_capacity_bytes()

    # Four (tile_n, g) blocks are live at once (double-buffered input + output);
    # keep their total under ~half of physical VMEM => per-block budget vmem/8.
    # v7x (64 MiB VMEM, ~3.2 TB/s HBM): 8 MiB blocks keep the ~0.35us fixed
    # per-grid-step overhead at a few %. v5e/v6e (128 MiB) get 16 MiB blocks.
    per_block_budget = vmem_bytes // 8
    bytes_per_row = g * itemsize
    max_tile = max(sub, (per_block_budget // bytes_per_row) // sub * sub)

    if tile_n is not None:
        # User-supplied tile: sublane-round and clamp to the VMEM budget.
        tile_n = max(sub, (int(tile_n) // sub) * sub)
        tile_n = min(tile_n, max_tile)
        if tile_n >= n:
            tile_n = n  # full-extent block is always layout-legal
    elif n <= max_tile:
        # Whole row range fits one block. Prefer 2 balanced blocks so both of
        # v7x's TensorCores get work ("parallel" row axis); the extra grid step
        # is ~0.35us noise on single-TC v5e/v6e.
        if n > 2 * sub:
            tile_n = _round_up(pl.cdiv(n, 2), sub)
        else:
            tile_n = n
    else:
        # Largest sublane-rounded tile within budget, balanced across steps so
        # the ragged last block isn't tiny. No forced step floor — extra grid
        # steps are pure per-step overhead on single-TC chips.
        steps = pl.cdiv(n, max_tile)
        tile_n = min(max_tile, _round_up(pl.cdiv(n, steps), sub))

    assert 4 * tile_n * g * itemsize <= vmem_bytes // 2 or tile_n == n
    # Scoped VMEM limit: footprint is <= vmem/2 by construction; leave headroom
    # for Mosaic internals (<= 48 MiB on v7x's 64 MiB, <= 96 MiB on v5e/v6e).
    vmem_limit = int(min(vmem_bytes * 3 // 4, 96 * 1024 * 1024))
    return tile_n, vmem_limit


def normalize_total(x_ng: jax.Array,
                    target_count: int = 10000,
                    eps: float = 1e-6,
                    tile_n: int | None = None,
                    donate_input: bool = False) -> jax.Array:
    """target_count * x / (x.sum(-1, keepdims=True) + eps), computed in Pallas."""
    n, g = x_ng.shape
    in_dtype = x_ng.dtype
    # Match torch promotion: integer counts produce a floating-point result.
    out_dtype = in_dtype if jnp.issubdtype(in_dtype, jnp.floating) else jnp.dtype(jnp.float32)

    tile_n, vmem_limit = _pick_tile_and_vmem(n, g, in_dtype, tile_n)
    # Ragged last block: rows past n are unspecified garbage in the input view
    # and their output writes are masked — safe because rows are independent.
    grid = (pl.cdiv(n, tile_n),)

    kernel = functools.partial(
        _normalize_total_kernel,
        target_count=float(target_count),
        eps=float(eps),
    )

    cost = pl.CostEstimate(
        flops=2 * n * g,
        transcendentals=0,
        bytes_accessed=n * g * (jnp.dtype(in_dtype).itemsize + jnp.dtype(out_dtype).itemsize),
    )
    aliases = {0: 0} if (donate_input and out_dtype == in_dtype) else {}

    return pl.pallas_call(
        kernel,
        out_shape=jax.ShapeDtypeStruct((n, g), out_dtype),
        grid=grid,
        in_specs=[pl.BlockSpec((tile_n, g), lambda i: (i, 0))],
        out_specs=pl.BlockSpec((tile_n, g), lambda i: (i, 0)),
        compiler_params=pltpu.CompilerParams(
            dimension_semantics=("parallel",),
            vmem_limit_bytes=vmem_limit,
        ),
        cost_estimate=cost,
        input_output_aliases=aliases,
    )(x_ng)


if __name__ == "__main__":
    key = jax.random.PRNGKey(0)

    # f32 case: 20 cells (exercises the ragged last block) x 256 genes.
    n_cells, n_genes = 20, 256
    x = jax.random.poisson(key, lam=3.0, shape=(n_cells, n_genes)).astype(jnp.float32)

    out = normalize_total(x, target_count=10000, eps=1e-6)
    out = jax.block_until_ready(out)

    ref = 10000.0 * x / (jnp.sum(x, axis=-1, keepdims=True) + 1e-6)
    assert out.shape == x.shape and out.dtype == x.dtype
    assert jnp.allclose(out, ref, rtol=1e-5, atol=1e-4)

    # bf16 case: exercises the dtype-aware (16-row) sublane rounding.
    xb = jax.random.poisson(jax.random.PRNGKey(1), lam=3.0, shape=(40, 256)).astype(jnp.bfloat16)
    outb = jax.block_until_ready(normalize_total(xb))
    xbf = xb.astype(jnp.float32)
    refb = 10000.0 * xbf / (jnp.sum(xbf, axis=-1, keepdims=True) + 1e-6)
    assert outb.dtype == jnp.bfloat16
    assert jnp.allclose(outb.astype(jnp.float32), refb, rtol=2e-2, atol=1e-1)

    print("KERNEL_OK")
</pallas_src>

<mosaic_0001>
module attributes {stable_mosaic.version = 11 : i64} {
  func.func @_normalize_total_kernel(%arg0: i32, %arg1: memref<16x256xf32, #tpu.memory_space<vmem>>, %arg2: memref<16x256xf32, #tpu.memory_space<vmem>>) attributes {dimension_semantics = [#tpu.dimension_semantics<parallel>], iteration_bounds = array<i64: 2>, scalar_prefetch = 0 : i64, scratch_operands = 0 : i64, tpu.core_type = #tpu.core_type<tc>, window_params = [{transform_indices = @transform_0, window_bounds = array<i64: 16, 256>}, {transform_indices = @transform_1, window_bounds = array<i64: 16, 256>}]} {
    %c0 = arith.constant 0 : index
    %c0_0 = arith.constant 0 : index
    %0 = vector.load %arg1[%c0, %c0_0] : memref<16x256xf32, #tpu.memory_space<vmem>>, vector<16x256xf32>
    %cst = arith.constant dense<0.000000e+00> : vector<16xf32>
    %1 = vector.multi_reduction <add>, %0, %cst [1] : vector<16x256xf32> to vector<16xf32>
    %2 = vector.shape_cast %1 : vector<16xf32> to vector<16x1xf32>
    %cst_1 = arith.constant 9.99999997E-7 : f32
    %3 = vector.broadcast %cst_1 : f32 to vector<16x1xf32>
    %4 = arith.addf %2, %3 : vector<16x1xf32>
    %5 = tpu.reciprocal %4 : vector<16x1xf32> -> vector<16x1xf32>
    %cst_2 = arith.constant 1.000000e+04 : f32
    %6 = vector.broadcast %cst_2 : f32 to vector<16x1xf32>
    %7 = arith.mulf %6, %5 : vector<16x1xf32>
    %8 = vector.broadcast %7 : vector<16x1xf32> to vector<16x256xf32>
    %9 = arith.mulf %0, %8 : vector<16x256xf32>
    %c0_3 = arith.constant 0 : index
    %c0_4 = arith.constant 0 : index
    %10 = vector.load %arg2[%c0_3, %c0_4] : memref<16x256xf32, #tpu.memory_space<vmem>>, vector<16x256xf32>
    tpu.vector_store %arg2[%c0_3, %c0_4], %9 {strides = array<i32>} : memref<16x256xf32, #tpu.memory_space<vmem>>, vector<16x256xf32>,
    return
  }
  func.func @transform_0(%arg0: i32) -> (i32, i32) {
    %c0_i32 = arith.constant 0 : i32
    %c0_i32_0 = arith.constant 0 : i32
    return %arg0, %c0_i32 : i32, i32
  }
  func.func @transform_1(%arg0: i32) -> (i32, i32) {
    %c0_i32 = arith.constant 0 : i32
    %c0_i32_0 = arith.constant 0 : i32
    return %arg0, %c0_i32 : i32, i32
  }
}

</mosaic_0001>

<bundles_post_ra>
// kernel: tpu_custom_call.1
= control target key start
LH: loop header
LB: loop body
LE: loop exit
PB: predicated region body
PF: predicated region fallthrough
CT: control target
= control target key end

     0   :  { %6 = vsyncpa [#allocation3], 0  ;;  %s703_s0 = inlined_call_operand.hbm [shape: f32[20,256], index: 0, kind: input, shape index: {}]   ;;  %s704_s1 = inlined_call_operand.hbm [shape: f32[20,256], index: 1, kind: output, shape index: {}]  }
   0x1   :  { %8 = vsyncpa [#allocation3 + $0x1], 0 }
   0x2   :  { %9 = vsyncpa [#allocation4], 0 }
   0x3   :  { %11 = vsyncpa [#allocation4 + $0x1], 0  ;;  %s519_s6 = smov 0   ;;  %s521_s7 = smov 0  }
   0x4   :  { %s523_s8 = smov 0   ;;  %s525_s9 = smov 0  }
   0x5 LB: > { %s540_s10 = sadd.s32 4294967295, %s501_s9   ;;  %s306_s11 = sadd.s32 4294967294, %s501_s9   ;;  %s501_s9 = sphi %s525_s9, %s715_s9   ;;  %s497_s8 = sphi %s523_s8, %s714_s8   ;;  %s493_s7 = sphi %s521_s7, %s713_s7   ;;  %s489_s6 = sphi %s519_s6, %s712_s6  }
   0x6   : > { %s544_s12 = sadd.s32 1, %s501_s9   ;;  %s24_s13 = sadd.s32 1, %s497_s8 }
   0x7   : > { %s21_s14 = ssub.s32 %s501_s9, %s544_s12  ;;  %p31_p0 = scmp.ne.s32.totalorder %s497_s8, %s493_s7 }
   0x8   : > { %p22_p1 = scmp.eq.s32.totalorder %s21_s14, 0  ;;  %p32_p2 = scmp.eq.s32.totalorder %s501_s9, 0 }
   0x9   : > { %p37_p3 = scmp.ne.s32.totalorder %s493_s7, %s489_s6  ;;  %p38_p4 = scmp.eq.s32.totalorder %s540_s10, 0 }
   0xa   : > { %s556_s15 = scalar_select %p22_p1, %s497_s8, %s24_s13  }
   0xb   : > { %p33_p5 = por %p32_p2, %p31_p0  ;;  %p558_p6 = por %p38_p4, %p37_p3 }
   0xc   : > { %p61_p7 = scmp.eq.s32.totalorder %s540_s10, 1  ;;  %p67_p8 = scmp.eq.s32.totalorder %s306_s11, 1 }
   0xd   : > { %p705_p11 = scmp.ge.s32.totalorder %s501_s9, 2 }
   0xe   : > { %p563_p9 = por %p61_p7, %p31_p0  ;;  %p567_p10 = por %p67_p8, %p37_p3 }
   0xf   : > { %83 = sbr.rel (%p705_p11) target bundleno = 56 (0x38), region = 16 }
  0x14   : > { %86 = sbr.rel (!%p33_p5) target bundleno = 56 (0x38), region = 20  ;;  %s87_s19 = sand.u32 (%p33_p5), 1, %s497_s8  }
  0x15   : > { %s310_s20 = sshll.u32 (%p33_p5), %s501_s9, 1  ;;  %s309_s21 = sshll.u32 (%p33_p5), %s87_s19, 5 }
  0x16   : > { %s93_s22 = ssub.s32 (%p33_p5), 3, %s310_s20  ;;  %s579_s26 = scalar_lea.sflag (%p33_p5), [#allocation3], %s87_s19 }
  0x17   : > { %p94_p12 = scmp.lt.s32.totalorder (%p33_p5), %s93_s22, 2  ;;  %s91_s27 = scalar_lea.vmem (%p33_p5), [#allocation2], %s309_s21 }
  0x19   : > { %s717_s22 = smov (!%p94_p12, %s93_s22), 2 }
  0x1a   : > { %s332_s23 = sshll.u32 %s717_s22, 4 }
  0x1b   : > { %s98_s24 = ssub.s32 32, %s332_s23 }
  0x1c   : > { %s99_s25 = sshll.u32 %s98_s24, 4 }
  0x1d   : > { %100 = vsyncadd %s579_s26, %s99_s25  ;;  %p582_p13 = scmp.ne.s32.totalorder %s332_s23, 0  ;;  %s334_s29 = sshll.u32 %s501_s9, 5 }
  0x1e   : > { %s104_s3 = scalar_lea.hbm %s703_s0, %s334_s29  ;;  %s590_s4 = sshll.u32 %s91_s27, 4  ;;  %s109_s4 = int_to_ptr.vmem [resolvable:$true] %s590_s4 }
  0x1f   : > { %s106_s5 = sshll.u32 %s104_s3, 4  ;;  %s317_s11 = sshll.u32 %s717_s22, 8  ;;  %s593_s5 = int_to_ptr.hbm [resolvable:$true] %s106_s5 }
  0x20   : > { %s385_s13 = sshra.s32 %s593_s5, 4  ;;  %s387_s14 = sshrl.u32 %s317_s11, 4  ;;  %s386_s13 = int_to_ptr.hbm [resolvable:$true] %s385_s13 }
  0x21   : > { %s392_s19 = scalar_lea.hbm %s386_s13, %s387_s14  ;;  %s396_s23 = scalar_lea.hbm %s703_s0, 48 }
  0x22   : > { %p393_p0 = scmp.ne.s32.totalorder %s386_s13, %s392_s19  ;;  %p397_p3 = scmp.lt.s32.totalorder %s386_s13, %s703_s0 }
  0x23   : > { %p398_p4 = scmp.lt.s32.totalorder %s396_s23, %s392_s19 }
  0x24   : > { %p394_p1 = pnand %p393_p0, %p582_p13 }
  0x25   : > { %p399_p5 = por %p398_p4, %p397_p3 }
  0x26   : > { %p395_p2 = pneg %p394_p1 }
  0x28   : > { %p400_p7 = pnand %p399_p5, %p395_p2 }
  0x2a   : > { %403 = shalt.err (!%p400_p7)
}
  0x2b   : > { %s404_s27 = sshra.s32 %s109_s4, 4  ;;  %s503_s30 = smov [#allocation2]   ;;  %s405_s27 = int_to_ptr.vmem [resolvable:$true] %s404_s27 }
  0x2c   : > { %s411_s29 = scalar_lea.vmem %s405_s27, %s387_s14  ;;  %s415_s2 = scalar_lea.vmem %s503_s30, 64 }
  0x2d   : > { %p412_p8 = scmp.ne.s32.totalorder %s405_s27, %s411_s29  ;;  %p417_p1 = scmp.lt.s32.totalorder %s415_s2, %s411_s29 }
  0x2f   : > { %p413_p12 = pnand %p412_p8, %p582_p13 }
  0x31   : > { %p414_p0 = pneg %p413_p12 }
  0x33   : > { %p419_p11 = pnand %p417_p1, %p414_p0 }
  0x35   : > { %422 = shalt.err (!%p419_p11)
}
  0x36   : > { %s504_s3 = smov 256   ;;  %s505_s13 = smov 16  }
  0x37   : > { %114 = dma.hbm_to_vmem [thread:$0]  (%p582_p13), %s593_s5, %s317_s11, %s109_s4, %s579_s26, %s504_s3, %s504_s3, %s505_s13  }
  0x38 PF: > { %p318_p2 = scmp.ge.s32.totalorder %s501_s9, 1  ;;  %p116_p3 = scmp.lt.s32.totalorder %s501_s9, 3 }
  0x3a   : > { %p117_p4 = pnand %p318_p2, %p116_p3 }
  0x3b   : > { %s622_s14 = sand.u32 (!%p117_p4), 1, %s493_s7  }
  0x3c   : > { %120 = sbr.rel (%p117_p4) target bundleno = 249 (0xf9), region = 24  ;;  %s319_s19 = sshll.u32 (!%p117_p4), %s622_s14, 5 }
  0x3d   : > { %s123_s28 = scalar_lea.sflag (!%p117_p4), [#allocation3], %s622_s14  ;;  %s126_s22 = scalar_lea.vmem (!%p117_p4), [#allocation2], %s319_s19 }
  0x41   : > { %480 = dma.done.wait (%p558_p6), %s123_s28, 512  }
  0x42   : > { %482 = vsyncadd (%p558_p6), %s123_s28, 4294966784  ;;  %v158_v0 = vld [vmem:[%s126_s22] sm:$0xff]  ;;  %v159_v1 = vld [vmem:[%s126_s22 + $0x8] sm:$0xff]  ;;  %s634_s16 = scalar_lea.vmem [#allocation5], %s319_s19  ;;  %s209_s26 = scalar_lea.sflag [#allocation4], %s622_s14 }
  0x43   : > { %v162_v2 = vadd.f32 %v159_v1, %v158_v0  ;;  %v160_v3 = vld [vmem:[%s126_s22 + $0x10] sm:$0xff]  ;;  %v161_v4 = vld [vmem:[%s126_s22 + $0x18] sm:$0xff]  ;;  %s322_s4 = sshll.u32 (%p563_p9), %s540_s10, 1 }
  0x44   : > { %v165_v5 = vadd.f32 %v161_v4, %v160_v3  ;;  %s217_s5 = ssub.s32 (%p563_p9), 3, %s322_s4 }
  0x45   : > { %163 = vadd.xlane.f32.xlu0 %v162_v2  ;;  %p218_p6 = scmp.lt.s32.totalorder (%p563_p9), %s217_s5, 2 }
  0x4d   : > { %166 = vadd.xlane.f32.xlu0 %v165_v5 }
  0xb8   : > { %v164_v6 = vpop.xlane.xlu0 %163 }
  0xb9   : > { %v168_v7 = vadd.f32 1e-06, %v164_v6 }
  0xbb   : > { %381 = vrcp.f32 %v168_v7  ;;  %v181_v13 = vand.u32 2147483648, %v168_v7  ;;  %v179_v15 = vand.u32 2147483647, %v168_v7  ;;  %vm175_vm1 = vweird.f32 %v168_v7 }
  0xbd   : > { %v182_v18 = vor.u32 1.1754944e-38, %v181_v13  ;;  %vm180_vm3 = vcmp.eq.f32.partialorder %v179_v15, 8.507059e+37 }
  0xc0   : > { %v167_v8 = vpop.xlane.xlu0 %166 }
  0xc1   : > { %v382_v9 = vpop.eup %381  ;;  %v169_v10 = vadd.f32 1e-06, %v167_v8 }
  0xc2   : > { %v171_v11 = vmul.f32 %v382_v9, %v168_v7  ;;  %vm176_vm0 = vweird.f32 %v382_v9 }
  0xc3   : > { %383 = vrcp.f32 %v169_v10  ;;  %vm177_vm2 = vmor %vm175_vm1, %vm176_vm0  ;;  %v193_v24 = vand.u32 2147483647, %v169_v10  ;;  %v195_v25 = vand.u32 2147483648, %v169_v10  ;;  %vm189_vm5 = vweird.f32 %v169_v10 }
  0xc4   : > { %v172_v12 = vsub.f32 1.0, %v171_v11 }
  0xc5   : > { %v196_v30 = vor.u32 1.1754944e-38, %v195_v25  ;;  %vm194_vm7 = vcmp.eq.f32.partialorder %v193_v24, 8.507059e+37 }
  0xc6   : > { %v173_v14 = vmul.f32 %v382_v9, %v172_v12 }
  0xc8   : > { %v174_v16 = vadd.f32 %v382_v9, %v173_v14 }
  0xc9   : > { %v384_v17 = vpop.eup %383 }
  0xca   : > { %v178_v19 = vsel %vm177_vm2, %v382_v9, %v174_v16  ;;  %v185_v20 = vmul.f32 %v384_v17, %v169_v10  ;;  %vm190_vm4 = vweird.f32 %v384_v17 }
  0xcb   : > { %v183_v21 = vsel %vm180_vm3, %v182_v18, %v178_v19  ;;  %vm191_vm6 = vmor %vm189_vm5, %vm190_vm4 }
  0xcc   : > { %v198_v22 = vmul.f32 10000.0, %v183_v21  ;;  %v186_v23 = vsub.f32 1.0, %v185_v20 }
  0xce   : > { %v200_v26 = vmul.f32 %v198_v22, %v158_v0  ;;  %v201_v27 = vmul.f32 %v198_v22, %v159_v1  ;;  %v187_v28 = vmul.f32 %v384_v17, %v186_v23 }
  0xd0   : > { %204 = vst [vmem:[%s634_s16] sm:$0xff] %v200_v26  ;;  %v188_v29 = vadd.f32 %v384_v17, %v187_v28 }
  0xd1   : > { %205 = vst [vmem:[%s634_s16 + $0x8] sm:$0xff] %v201_v27 }
  0xd2   : > { %v192_v31 = vsel %vm191_vm6, %v384_v17, %v188_v29 }
  0xd3   : > { %v197_v32 = vsel %vm194_vm7, %v196_v30, %v192_v31 }
  0xd4   : > { %v199_v33 = vmul.f32 10000.0, %v197_v32 }
  0xd5   : > { %215 = sbr.rel (!%p563_p9) target bundleno = 249 (0xf9), region = 32 }
  0xd6   : > { %v202_v34 = vmul.f32 %v199_v33, %v160_v3  ;;  %v203_v35 = vmul.f32 %v199_v33, %v161_v4 }
  0xd8   : > { %206 = vst [vmem:[%s634_s16 + $0x10] sm:$0xff] %v202_v34 }
  0xd9   : > { %207 = vst [vmem:[%s634_s16 + $0x18] sm:$0xff] %v203_v35 }
  0xda   : > { %s719_s5 = smov (!%p218_p6, %s217_s5), 2 }
  0xdb   : > { %s335_s11 = sshll.u32 %s719_s5, 4 }
  0xdc   : > { %s222_s20 = ssub.s32 32, %s335_s11 }
  0xdd   : > { %s223_s21 = sshll.u32 %s222_s20, 4 }
  0xde   : > { %224 = vsyncadd %s209_s26, %s223_s21  ;;  %p649_p11 = scmp.ne.s32.totalorder %s335_s11, 0  ;;  %s337_s23 = sshll.u32 %s540_s10, 5 }
  0xdf   : > { %s228_s27 = scalar_lea.hbm %s704_s1, %s337_s23  ;;  %s230_s29 = sshll.u32 %s634_s16, 4  ;;  %s658_s29 = int_to_ptr.vmem [resolvable:$true] %s230_s29 }
  0xe0   : > { %s232_s30 = sshll.u32 %s228_s27, 4  ;;  %s329_s2 = sshll.u32 %s719_s5, 8  ;;  %s660_s30 = int_to_ptr.hbm [resolvable:$true] %s232_s30 }
  0xe1   : > { %s424_s3 = sshra.s32 %s658_s29, 4  ;;  %s426_s13 = sshrl.u32 %s329_s2, 4  ;;  %s425_s3 = int_to_ptr.vmem [resolvable:$true] %s424_s3 }
  0xe2   : > { %s431_s19 = scalar_lea.vmem %s425_s3, %s426_s13  ;;  %s506_s10 = smov [#allocation5]  }
  0xe3   : > { %p432_p9 = scmp.ne.s32.totalorder %s425_s3, %s431_s19  ;;  %s435_s28 = scalar_lea.vmem %s506_s10, 64 }
  0xe4   : > { %p437_p7 = scmp.lt.s32.totalorder %s435_s28, %s431_s19 }
  0xe5   : > { %p433_p13 = pnand %p432_p9, %p649_p11 }
  0xe7   : > { %p434_p5 = pneg %p433_p13 }
  0xe9   : > { %p439_p8 = pnand %p437_p7, %p434_p5 }
  0xeb   : > { %442 = shalt.err (!%p439_p8)
}
  0xec   : > { %s443_s22 = sshra.s32 %s660_s30, 4  ;;  %s454_s20 = scalar_lea.hbm %s704_s1, 48  ;;  %s444_s22 = int_to_ptr.hbm [resolvable:$true] %s443_s22 }
  0xed   : > { %s450_s16 = scalar_lea.hbm %s444_s22, %s426_s13  ;;  %p455_p2 = scmp.lt.s32.totalorder %s444_s22, %s704_s1 }
  0xee   : > { %p451_p12 = scmp.ne.s32.totalorder %s444_s22, %s450_s16  ;;  %p456_p3 = scmp.lt.s32.totalorder %s454_s20, %s450_s16 }
  0xf0   : > { %p452_p0 = pnand %p451_p12, %p649_p11  ;;  %p457_p4 = por %p456_p3, %p455_p2 }
  0xf2   : > { %p453_p1 = pneg %p452_p0 }
  0xf4   : > { %p458_p6 = pnand %p457_p4, %p453_p1 }
  0xf6   : > { %461 = shalt.err (!%p458_p6)
}
  0xf7   : > { %s507_s24 = smov 256   ;;  %s508_s25 = smov 16  }
  0xf8   : > { %238 = dma.vmem_to_hbm [thread:$0]  (%p649_p11), %s658_s29, %s329_s2, %s660_s30, %s209_s26, %s507_s24, %s507_s24, %s508_s25  }
  0xf9 PF: > { %s247_s27 = sand.u32 1, %s489_s6   ;;  %p711_p9 = scmp.ge.s32.totalorder %s501_s9, 2 }
  0xfa   : > { %s248_s3 = scalar_lea.sflag [#allocation4], %s247_s27 }
  0xfb   : > { %p341_p13 = pnand %p711_p9, %p567_p10 }
  0xfd   : > { %p342_p5 = pneg %p341_p13 }
  0xff   : > { %484 = dma.done.wait (%p342_p5), %s248_s3, 512  }
 0x100   : > { %486 = vsyncadd (%p342_p5), %s248_s3, 4294966784  ;;  %p14_p7 = scmp.ge.s32.totalorder %s544_s12, 4   ;;  %s712_s6 = smov %s493_s7 }
 0x101   : > { %s713_s7 = smov %s497_s8  ;;  %s714_s8 = smov %s556_s15 }
 0x102   : > { %s715_s9 = smov %s544_s12  ;;  %16 = sbr.rel (!%p14_p7) target bundleno = 5 (0x5), region = 69 }
 0x107   :  { %254 = vsyncpa [#allocation3], 1 }
 0x108   :  { %256 = vsyncpa [#allocation3 + $0x1], 1 }
 0x109   :  { %257 = vsyncpa [#allocation4], 1 }
 0x10a   :  { %259 = vsyncpa [#allocation4 + $0x1], 1 }

</bundles_post_ra>
